<compile_context>
chip_gen: v7x
topology: tpu7x:2x2x1
jax: 0.10.0
libtpu: 0.0.40
codegen_flags: <defaults>
</compile_context>

<pallas_src>
import jax
import jax.numpy as jnp
from jax.experimental import pallas as pl
from jax.experimental.pallas import tpu as pltpu

_PAD_LANES = 128  # lane-dense slab width (one full vreg lane extent)


def _round_up(x, m):
    return ((x + m - 1) // m) * m


def _soft_q_kernel(s_ref, a_ref,
                   w1s_ref, w1a_ref, b1_ref,
                   w2_ref, b2_ref,
                   w3_ref, b3_ref,
                   out_ref):
    wt = w1s_ref.dtype  # matmul operand dtype (f32 or bf16); accumulation is f32.

    # Layer 1: concat([state, action]) folded in as two dots summed.
    h = (jnp.dot(s_ref[...].astype(wt), w1s_ref[...],
                 preferred_element_type=jnp.float32)
         + jnp.dot(a_ref[...].astype(wt), w1a_ref[...],
                   preferred_element_type=jnp.float32)
         + b1_ref[...])
    h = jnp.maximum(h, 0.0)                                          # ReLU (f32 VPU)

    # Layer 2: block-diagonal fused twin-head weights ([W2a 0; 0 W2b], lane-padded).
    h = (jnp.dot(h.astype(wt), w2_ref[...],
                 preferred_element_type=jnp.float32) + b2_ref[...])
    h = jnp.maximum(h, 0.0)                                          # ReLU (f32 VPU)

    # Layer 3: lane-padded head slab; column 0 = q1, column 1 = q2, rest zeros.
    out_ref[...] = (jnp.dot(h.astype(wt), w3_ref[...],
                            preferred_element_type=jnp.float32) + b3_ref[...])
    # TODO(synk): fuse min(q1,q2) / target scale+add here when wiring the SAC update.


def soft_q_forward(state, action, packed, *, tile_batch=256):
    """state: (B, S) f32, action: (B, A) f32, packed: dict from pack_params()."""
    B, S = state.shape
    A = action.shape[1]
    w1s, w1a, b1 = packed["w1_state"], packed["w1_action"], packed["b1"]
    w2, b2, w3, b3 = packed["w2"], packed["b2"], packed["w3"], packed["b3"]
    PH1 = w1s.shape[1]
    PH2 = w2.shape[1]

    # Batch tile: multiple of 8 (f32 sublane), never larger than the (padded) batch.
    TB = min(_round_up(tile_batch, 8), _round_up(B, 8))
    Bp = _round_up(B, TB)
    if Bp != B:  # ragged last tile -> zero-pad the batch, slice away afterwards.
        state = jnp.pad(state, ((0, Bp - B), (0, 0)))
        action = jnp.pad(action, ((0, Bp - B), (0, 0)))
    grid = (Bp // TB,)

    weight_bytes = sum(int(a.size) * a.dtype.itemsize
                       for a in (w1s, w1a, b1, w2, b2, w3, b3))
    act_bytes = (Bp * (S + A)) * state.dtype.itemsize + Bp * _PAD_LANES * 4
    flops = 2 * Bp * ((S + A) * PH1 + PH1 * PH2 + PH2 * _PAD_LANES)

    out = pl.pallas_call(
        _soft_q_kernel,
        out_shape=jax.ShapeDtypeStruct((Bp, _PAD_LANES), jnp.float32),
        grid=grid,
        in_specs=[
            # Activations: tiled along the batch grid axis.
            pl.BlockSpec((TB, S), lambda i: (i, 0)),
            pl.BlockSpec((TB, A), lambda i: (i, 0)),
            # Weights/biases: constant index maps -> fetched once, VMEM-resident.
            pl.BlockSpec(w1s.shape, lambda i: (0, 0)),
            pl.BlockSpec(w1a.shape, lambda i: (0, 0)),
            pl.BlockSpec(b1.shape, lambda i: (0, 0)),
            pl.BlockSpec(w2.shape, lambda i: (0, 0)),
            pl.BlockSpec(b2.shape, lambda i: (0, 0)),
            pl.BlockSpec(w3.shape, lambda i: (0, 0)),
            pl.BlockSpec(b3.shape, lambda i: (0, 0)),
        ],
        out_specs=pl.BlockSpec((TB, _PAD_LANES), lambda i: (i, 0)),
        compiler_params=pltpu.CompilerParams(
            dimension_semantics=("parallel",)),          # shard batch across v7x TCs
        cost_estimate=pl.CostEstimate(flops=flops, transcendentals=0,
                                      bytes_accessed=weight_bytes + act_bytes),
    )(state, action, w1s, w1a, b1, w2, b2, w3, b3)

    q1 = out[:B, 0:1]
    q2 = out[:B, 1:2]
    return q1, q2


def init_params(key, num_states, num_actions, hidden_size, init_w=0.003):
    """PyTorch-faithful per-head init: nn.Linear defaults for hidden layers,
    uniform(-init_w, init_w) on the final layer (as in the module __init__)."""
    if isinstance(hidden_size, int):
        hidden_size = [hidden_size, hidden_size]
    num_inputs = num_states + num_actions
    dims = [num_inputs, hidden_size[0], hidden_size[1], 1]

    params = {}
    for head in ("a", "b"):
        for layer in range(3):
            fan_in, fan_out = dims[layer], dims[layer + 1]
            key, kw, kb = jax.random.split(key, 3)
            bound = init_w if layer == 2 else 1.0 / jnp.sqrt(fan_in)
            w = jax.random.uniform(kw, (fan_in, fan_out), jnp.float32, -bound, bound)
            b = jax.random.uniform(kb, (1, fan_out), jnp.float32, -bound, bound)
            params[f"w{layer + 1}{head}"] = w
            params[f"b{layer + 1}{head}"] = b
    return params


def pack_params(params, num_states, hidden_size, *, weight_dtype=jnp.float32):
    """Fuse the twin-head per-layer params into lane-dense block weights.

    Fused hidden widths (2*h0, 2*h1) are zero-padded up to multiples of 128 lanes so
    all kernel intermediates are lane-dense.  Padded columns/rows are exactly zero, so
    ReLU keeps them zero and the block-diagonal head separation is preserved.
    Biases stay f32 (bias+ReLU run on the f32 VPU path on all chips)."""
    if isinstance(hidden_size, int):
        hidden_size = [hidden_size, hidden_size]
    h0, h1 = hidden_size
    PH1 = _round_up(2 * h0, _PAD_LANES)
    PH2 = _round_up(2 * h1, _PAD_LANES)
    n_in = params["w1a"].shape[0]  # S + A

    # Layer 1: heads side by side along the (padded) output dim.
    w1 = jnp.zeros((n_in, PH1), jnp.float32)
    w1 = w1.at[:, :h0].set(params["w1a"]).at[:, h0:2 * h0].set(params["w1b"])
    b1 = jnp.zeros((1, PH1), jnp.float32)
    b1 = b1.at[:, :h0].set(params["b1a"]).at[:, h0:2 * h0].set(params["b1b"])

    # Layer 2: block-diagonal so the heads stay independent; padded region is zero.
    w2 = jnp.zeros((PH1, PH2), jnp.float32)
    w2 = w2.at[:h0, :h1].set(params["w2a"]).at[h0:2 * h0, h1:2 * h1].set(params["w2b"])
    b2 = jnp.zeros((1, PH2), jnp.float32)
    b2 = b2.at[:, :h1].set(params["b2a"]).at[:, h1:2 * h1].set(params["b2b"])

    # Layer 3: lane-padded slab; column 0 = q1 head, column 1 = q2 head.
    w3 = jnp.zeros((PH2, _PAD_LANES), jnp.float32)
    w3 = w3.at[:h1, 0:1].set(params["w3a"]).at[h1:2 * h1, 1:2].set(params["w3b"])
    b3 = jnp.zeros((1, _PAD_LANES), jnp.float32)
    b3 = b3.at[:, 0:1].set(params["b3a"]).at[:, 1:2].set(params["b3b"])

    return {
        "w1_state": w1[:num_states].astype(weight_dtype),   # (S, PH1)
        "w1_action": w1[num_states:].astype(weight_dtype),  # (A, PH1)
        "b1": b1,
        "w2": w2.astype(weight_dtype), "b2": b2,
        "w3": w3.astype(weight_dtype), "b3": b3,
    }


def reference_forward(state, action, params):
    """Pure-JAX reference with the original (unpacked) per-head params."""
    x = jnp.concatenate([state, action], axis=1)

    def mlp(h, w1, b1, w2, b2, w3, b3):
        h = jnp.maximum(h @ w1 + b1, 0.0)
        h = jnp.maximum(h @ w2 + b2, 0.0)
        return h @ w3 + b3

    q1 = mlp(x, params["w1a"], params["b1a"], params["w2a"], params["b2a"],
             params["w3a"], params["b3a"])
    q2 = mlp(x, params["w1b"], params["b1b"], params["w2b"], params["b2b"],
             params["w3b"], params["b3b"])
    return q1, q2


if __name__ == "__main__":
    num_states, num_actions, hidden = 24, 8, 32

    key = jax.random.PRNGKey(0)
    k_s, k_a, k_p, k_s2, k_a2 = jax.random.split(key, 5)
    params = init_params(k_p, num_states, num_actions, hidden)

    # --- f32 path, single-tile grid (batch=8) ---------------------------------
    batch = 8
    state = jax.random.normal(k_s, (batch, num_states), jnp.float32)
    action = jax.random.normal(k_a, (batch, num_actions), jnp.float32)
    packed_f32 = pack_params(params, num_states, hidden)

    q1, q2 = soft_q_forward(state, action, packed_f32)
    jax.block_until_ready((q1, q2))
    q1_ref, q2_ref = reference_forward(state, action, params)
    assert q1.shape == (batch, 1) and q2.shape == (batch, 1)
    assert jnp.allclose(q1, q1_ref, atol=1e-4, rtol=1e-4)
    assert jnp.allclose(q2, q2_ref, atol=1e-4, rtol=1e-4)

    # --- f32 path, multi-tile grid with a ragged (padded) last tile -----------
    batch2 = 20
    state2 = jax.random.normal(k_s2, (batch2, num_states), jnp.float32)
    action2 = jax.random.normal(k_a2, (batch2, num_actions), jnp.float32)
    q1b, q2b = soft_q_forward(state2, action2, packed_f32, tile_batch=8)
    jax.block_until_ready((q1b, q2b))
    q1b_ref, q2b_ref = reference_forward(state2, action2, params)
    assert q1b.shape == (batch2, 1) and q2b.shape == (batch2, 1)
    assert jnp.allclose(q1b, q1b_ref, atol=1e-4, rtol=1e-4)
    assert jnp.allclose(q2b, q2b_ref, atol=1e-4, rtol=1e-4)

    # --- bf16-weight path (v6e/v7x MXU fast path), loose tolerance ------------
    packed_bf16 = pack_params(params, num_states, hidden, weight_dtype=jnp.bfloat16)
    q1h, q2h = soft_q_forward(state, action, packed_bf16)
    jax.block_until_ready((q1h, q2h))
    assert q1h.shape == (batch, 1) and q2h.shape == (batch, 1)
    assert jnp.allclose(q1h, q1_ref, atol=5e-2, rtol=5e-2)
    assert jnp.allclose(q2h, q2_ref, atol=5e-2, rtol=5e-2)

    print("KERNEL_OK")
</pallas_src>

<mosaic_0001>
module attributes {stable_mosaic.version = 11 : i64} {
  func.func @_soft_q_kernel(%arg0: i32, %arg1: memref<8x24xf32, #tpu.memory_space<vmem>>, %arg2: memref<8x8xf32, #tpu.memory_space<vmem>>, %arg3: memref<24x128xf32, #tpu.memory_space<vmem>>, %arg4: memref<8x128xf32, #tpu.memory_space<vmem>>, %arg5: memref<1x128xf32, #tpu.memory_space<vmem>>, %arg6: memref<128x128xf32, #tpu.memory_space<vmem>>, %arg7: memref<1x128xf32, #tpu.memory_space<vmem>>, %arg8: memref<128x128xf32, #tpu.memory_space<vmem>>, %arg9: memref<1x128xf32, #tpu.memory_space<vmem>>, %arg10: memref<8x128xf32, #tpu.memory_space<vmem>>) attributes {dimension_semantics = [#tpu.dimension_semantics<parallel>], iteration_bounds = array<i64: 1>, scalar_prefetch = 0 : i64, scratch_operands = 0 : i64, tpu.core_type = #tpu.core_type<tc>, window_params = [{transform_indices = @transform_0, window_bounds = array<i64: 8, 24>}, {transform_indices = @transform_1, window_bounds = array<i64: 8, 8>}, {pipeline_mode = #tpu.pipeline_mode<synchronous>, transform_indices = @transform_2, window_bounds = array<i64: 24, 128>}, {pipeline_mode = #tpu.pipeline_mode<synchronous>, transform_indices = @transform_3, window_bounds = array<i64: 8, 128>}, {pipeline_mode = #tpu.pipeline_mode<synchronous>, transform_indices = @transform_4, window_bounds = array<i64: 1, 128>}, {pipeline_mode = #tpu.pipeline_mode<synchronous>, transform_indices = @transform_5, window_bounds = array<i64: 128, 128>}, {pipeline_mode = #tpu.pipeline_mode<synchronous>, transform_indices = @transform_6, window_bounds = array<i64: 1, 128>}, {pipeline_mode = #tpu.pipeline_mode<synchronous>, transform_indices = @transform_7, window_bounds = array<i64: 128, 128>}, {pipeline_mode = #tpu.pipeline_mode<synchronous>, transform_indices = @transform_8, window_bounds = array<i64: 1, 128>}, {transform_indices = @transform_9, window_bounds = array<i64: 8, 128>}]} {
    %c0 = arith.constant 0 : index
    %c0_0 = arith.constant 0 : index
    %0 = vector.load %arg1[%c0, %c0_0] : memref<8x24xf32, #tpu.memory_space<vmem>>, vector<8x24xf32>
    %c0_1 = arith.constant 0 : index
    %c0_2 = arith.constant 0 : index
    %1 = vector.load %arg3[%c0_1, %c0_2] : memref<24x128xf32, #tpu.memory_space<vmem>>, vector<24x128xf32>
    %cst = arith.constant dense<0.000000e+00> : vector<8x128xf32>
    %2 = tpu.matmul %0, %1, %cst {dimension_numbers = #tpu.dot_dimension_numbers<[1], [0], [0], [1], [0, 0, 1, 1], [], []>} : vector<8x24xf32>, vector<24x128xf32>, vector<8x128xf32> -> vector<8x128xf32>
    %c0_3 = arith.constant 0 : index
    %c0_4 = arith.constant 0 : index
    %3 = vector.load %arg2[%c0_3, %c0_4] : memref<8x8xf32, #tpu.memory_space<vmem>>, vector<8x8xf32>
    %c0_5 = arith.constant 0 : index
    %c0_6 = arith.constant 0 : index
    %4 = vector.load %arg4[%c0_5, %c0_6] : memref<8x128xf32, #tpu.memory_space<vmem>>, vector<8x128xf32>
    %cst_7 = arith.constant dense<0.000000e+00> : vector<8x128xf32>
    %5 = tpu.matmul %3, %4, %cst_7 {dimension_numbers = #tpu.dot_dimension_numbers<[1], [0], [0], [1], [0, 0, 1, 1], [], []>} : vector<8x8xf32>, vector<8x128xf32>, vector<8x128xf32> -> vector<8x128xf32>
    %6 = arith.addf %2, %5 : vector<8x128xf32>
    %c0_8 = arith.constant 0 : index
    %c0_9 = arith.constant 0 : index
    %7 = vector.load %arg5[%c0_8, %c0_9] : memref<1x128xf32, #tpu.memory_space<vmem>>, vector<1x128xf32>
    %8 = vector.broadcast %7 : vector<1x128xf32> to vector<8x128xf32>
    %9 = arith.addf %6, %8 : vector<8x128xf32>
    %cst_10 = arith.constant 0.000000e+00 : f32
    %10 = vector.broadcast %cst_10 : f32 to vector<8x128xf32>
    %11 = arith.maximumf %9, %10 : vector<8x128xf32>
    %c0_11 = arith.constant 0 : index
    %c0_12 = arith.constant 0 : index
    %12 = vector.load %arg6[%c0_11, %c0_12] : memref<128x128xf32, #tpu.memory_space<vmem>>, vector<128x128xf32>
    %cst_13 = arith.constant dense<0.000000e+00> : vector<8x128xf32>
    %13 = tpu.matmul %11, %12, %cst_13 {dimension_numbers = #tpu.dot_dimension_numbers<[1], [0], [0], [1], [0, 0, 1, 1], [], []>} : vector<8x128xf32>, vector<128x128xf32>, vector<8x128xf32> -> vector<8x128xf32>
    %c0_14 = arith.constant 0 : index
    %c0_15 = arith.constant 0 : index
    %14 = vector.load %arg7[%c0_14, %c0_15] : memref<1x128xf32, #tpu.memory_space<vmem>>, vector<1x128xf32>
    %15 = vector.broadcast %14 : vector<1x128xf32> to vector<8x128xf32>
    %16 = arith.addf %13, %15 : vector<8x128xf32>
    %cst_16 = arith.constant 0.000000e+00 : f32
    %17 = vector.broadcast %cst_16 : f32 to vector<8x128xf32>
    %18 = arith.maximumf %16, %17 : vector<8x128xf32>
    %c0_17 = arith.constant 0 : index
    %c0_18 = arith.constant 0 : index
    %19 = vector.load %arg8[%c0_17, %c0_18] : memref<128x128xf32, #tpu.memory_space<vmem>>, vector<128x128xf32>
    %cst_19 = arith.constant dense<0.000000e+00> : vector<8x128xf32>
    %20 = tpu.matmul %18, %19, %cst_19 {dimension_numbers = #tpu.dot_dimension_numbers<[1], [0], [0], [1], [0, 0, 1, 1], [], []>} : vector<8x128xf32>, vector<128x128xf32>, vector<8x128xf32> -> vector<8x128xf32>
    %c0_20 = arith.constant 0 : index
    %c0_21 = arith.constant 0 : index
    %21 = vector.load %arg9[%c0_20, %c0_21] : memref<1x128xf32, #tpu.memory_space<vmem>>, vector<1x128xf32>
    %22 = vector.broadcast %21 : vector<1x128xf32> to vector<8x128xf32>
    %23 = arith.addf %20, %22 : vector<8x128xf32>
    %c0_22 = arith.constant 0 : index
    %c0_23 = arith.constant 0 : index
    %24 = vector.load %arg10[%c0_22, %c0_23] : memref<8x128xf32, #tpu.memory_space<vmem>>, vector<8x128xf32>
    tpu.vector_store %arg10[%c0_22, %c0_23], %23 {strides = array<i32>} : memref<8x128xf32, #tpu.memory_space<vmem>>, vector<8x128xf32>,
    return
  }
  func.func @transform_0(%arg0: i32) -> (i32, i32) {
    %c0_i32 = arith.constant 0 : i32
    %c0_i32_0 = arith.constant 0 : i32
    return %arg0, %c0_i32 : i32, i32
  }
  func.func @transform_1(%arg0: i32) -> (i32, i32) {
    %c0_i32 = arith.constant 0 : i32
    %c0_i32_0 = arith.constant 0 : i32
    return %arg0, %c0_i32 : i32, i32
  }
  func.func @transform_2(%arg0: i32) -> (i32, i32) {
    %c0_i32 = arith.constant 0 : i32
    %c0_i32_0 = arith.constant 0 : i32
    %c0_i32_1 = arith.constant 0 : i32
    return %c0_i32, %c0_i32_0 : i32, i32
  }
  func.func @transform_3(%arg0: i32) -> (i32, i32) {
    %c0_i32 = arith.constant 0 : i32
    %c0_i32_0 = arith.constant 0 : i32
    %c0_i32_1 = arith.constant 0 : i32
    return %c0_i32, %c0_i32_0 : i32, i32
  }
  func.func @transform_4(%arg0: i32) -> (i32, i32) {
    %c0_i32 = arith.constant 0 : i32
    %c0_i32_0 = arith.constant 0 : i32
    %c0_i32_1 = arith.constant 0 : i32
    return %c0_i32, %c0_i32_0 : i32, i32
  }
  func.func @transform_5(%arg0: i32) -> (i32, i32) {
    %c0_i32 = arith.constant 0 : i32
    %c0_i32_0 = arith.constant 0 : i32
    %c0_i32_1 = arith.constant 0 : i32
    return %c0_i32, %c0_i32_0 : i32, i32
  }
  func.func @transform_6(%arg0: i32) -> (i32, i32) {
    %c0_i32 = arith.constant 0 : i32
    %c0_i32_0 = arith.constant 0 : i32
    %c0_i32_1 = arith.constant 0 : i32
    return %c0_i32, %c0_i32_0 : i32, i32
  }
  func.func @transform_7(%arg0: i32) -> (i32, i32) {
    %c0_i32 = arith.constant 0 : i32
    %c0_i32_0 = arith.constant 0 : i32
    %c0_i32_1 = arith.constant 0 : i32
    return %c0_i32, %c0_i32_0 : i32, i32
  }
  func.func @transform_8(%arg0: i32) -> (i32, i32) {
    %c0_i32 = arith.constant 0 : i32
    %c0_i32_0 = arith.constant 0 : i32
    %c0_i32_1 = arith.constant 0 : i32
    return %c0_i32, %c0_i32_0 : i32, i32
  }
  func.func @transform_9(%arg0: i32) -> (i32, i32) {
    %c0_i32 = arith.constant 0 : i32
    %c0_i32_0 = arith.constant 0 : i32
    return %arg0, %c0_i32 : i32, i32
  }
}

</mosaic_0001>

<bundles_post_ra>
// kernel: tpu_custom_call.1
= control target key start
LH: loop header
LB: loop body
LE: loop exit
PB: predicated region body
PF: predicated region fallthrough
CT: control target
= control target key end

     0   :  { %14 = vsyncpa [#allocation3], 0  ;;  %s971_s0 = inlined_call_operand.hbm [shape: f32[8,24], index: 0, kind: input, shape index: {}]   ;;  %s972_s1 = inlined_call_operand.hbm [shape: f32[8,8], index: 1, kind: input, shape index: {}]   ;;  %s973_s2 = inlined_call_operand.hbm [shape: f32[24,128], index: 2, kind: input, shape index: {}]   ;;  %s974_s3 = inlined_call_operand.vmem [shape: f32[8,128], index: 3, kind: input, shape index: {}]   ;;  %s975_s4 = inlined_call_operand.vmem [shape: f32[1,128], index: 4, kind: input, shape index: {}]   ;;  %s976_s5 = inlined_call_operand.hbm [shape: f32[128,128], index: 5, kind: input, shape index: {}]   ;;  %s977_s6 = inlined_call_operand.vmem [shape: f32[1,128], index: 6, kind: input, shape index: {}]   ;;  %s978_s7 = inlined_call_operand.hbm [shape: f32[128,128], index: 7, kind: input, shape index: {}]   ;;  %s979_s8 = inlined_call_operand.vmem [shape: f32[1,128], index: 8, kind: input, shape index: {}]   ;;  %s980_s9 = inlined_call_operand.hbm [shape: f32[8,128], index: 9, kind: output, shape index: {}]  }
   0x1   :  { %15 = vsyncpa [#allocation6], 0 }
   0x2   :  { %16 = vsyncpa [#allocation9], 0 }
   0x3   :  { %17 = vsyncpa [#allocation4], 0  ;;  %s796_s30 = smov [#allocation5]   ;;  %s656_s13 = scalar_lea.hbm %s972_s1, 128 }
   0x4   :  { %s34_s10 = sshll.u32 %s796_s30, 4  ;;  %p657_p0 = scmp.ne.s32.totalorder %s972_s1, %s656_s13  ;;  %s35_s10 = int_to_ptr.vmem [resolvable:$true] %s34_s10 }
   0x5   :  { %p660_p1 = scmp.lt.u32.totalorder %s656_s13, %s972_s1 }
   0x7   :  { %p662_p2 = pnand %p660_p1, %p657_p0 }
   0x9   :  { %665 = shalt.err (!%p662_p2)
}
   0xa   :  { %s666_s18 = scalar_lea.vmem %s35_s10, 128  ;;  %p671_p4 = scmp.lt.s32.totalorder %s35_s10, %s35_s10 }
   0xb   :  { %p667_p3 = scmp.ne.s32.totalorder %s35_s10, %s666_s18  ;;  %p672_p5 = scmp.lt.s32.totalorder %s666_s18, %s666_s18 }
   0xd   :  { %p673_p6 = por %p672_p5, %p671_p4 }
   0xf   :  { %p674_p7 = pnand %p673_p6, %p667_p3 }
  0x11   :  { %677 = shalt.err (!%p674_p7)
}
  0x12   :  { %37 = dma.hbm_to_vmem [thread:$0]  %s972_s1, 128, %s35_s10, [#allocation6]  }
  0x13   :  { %s797_s21 = smov [#allocation8]   ;;  %s798_s23 = smov [#allocation2]  }
  0x14   :  { %s59_s22 = sshll.u32 %s797_s21, 4  ;;  %s24_s24 = sshll.u32 %s798_s23, 4  ;;  %s60_s22 = int_to_ptr.vmem [resolvable:$true] %s59_s22  ;;  %s25_s24 = int_to_ptr.vmem [resolvable:$true] %s24_s24 }
  0x15   :  { %s678_s27 = scalar_lea.hbm %s976_s5, 2048 }
  0x16   :  { %p679_p8 = scmp.ne.s32.totalorder %s976_s5, %s678_s27  ;;  %p682_p9 = scmp.lt.u32.totalorder %s678_s27, %s976_s5 }
  0x18   :  { %p684_p10 = pnand %p682_p9, %p679_p8 }
  0x1a   :  { %687 = shalt.err (!%p684_p10)
}
  0x1b   :  { %s688_s1 = scalar_lea.vmem %s60_s22, 2048  ;;  %p693_p12 = scmp.lt.s32.totalorder %s60_s22, %s60_s22 }
  0x1c   :  { %p689_p11 = scmp.ne.s32.totalorder %s60_s22, %s688_s1  ;;  %p694_p13 = scmp.lt.s32.totalorder %s688_s1, %s688_s1 }
  0x1e   :  { %p695_p0 = por %p694_p13, %p693_p12 }
  0x20   :  { %p696_p1 = pnand %p695_p0, %p689_p11 }
  0x22   :  { %699 = shalt.err (!%p696_p1)
}
  0x23   :  { %s799_s10 = smov 128   ;;  %s800_s12 = smov 8  }
  0x24   :  { %65 = dma.hbm_to_vmem [thread:$0]  %s976_s5, 2048, %s60_s22, [#allocation9], %s799_s10, %s799_s10, %s800_s12  }
  0x25   :  { %s700_s17 = scalar_lea.hbm %s971_s0, 128 }
  0x26   :  { %p701_p2 = scmp.ne.s32.totalorder %s971_s0, %s700_s17  ;;  %p704_p3 = scmp.lt.u32.totalorder %s700_s17, %s971_s0 }
  0x28   :  { %p706_p4 = pnand %p704_p3, %p701_p2 }
  0x2a   :  { %709 = shalt.err (!%p706_p4)
}
  0x2b   :  { %s710_s23 = scalar_lea.vmem %s25_s24, 128  ;;  %p715_p6 = scmp.lt.s32.totalorder %s25_s24, %s25_s24 }
  0x2c   :  { %p711_p5 = scmp.ne.s32.totalorder %s25_s24, %s710_s23  ;;  %p716_p7 = scmp.lt.s32.totalorder %s710_s23, %s710_s23 }
  0x2e   :  { %p717_p8 = por %p716_p7, %p715_p6 }
  0x30   :  { %p718_p9 = pnand %p717_p8, %p711_p5 }
  0x32   :  { %721 = shalt.err (!%p718_p9)
}
  0x33   :  { %27 = dma.hbm_to_vmem [thread:$0]  %s971_s0, 128, %s25_s24, [#allocation3]  }
  0x34   :  { %s801_s25 = smov [#allocation7]   ;;  %s802_s27 = smov [#allocation10]  }
  0x35   :  { %s43_s26 = sshll.u32 %s801_s25, 4  ;;  %s73_s28 = sshll.u32 %s802_s27, 4  ;;  %s44_s26 = int_to_ptr.vmem [resolvable:$true] %s43_s26  ;;  %s74_s28 = int_to_ptr.vmem [resolvable:$true] %s73_s28 }
  0x36   :  { %s722_s11 = scalar_lea.hbm %s973_s2, 384 }
  0x37   :  { %p723_p10 = scmp.ne.s32.totalorder %s973_s2, %s722_s11  ;;  %p726_p11 = scmp.lt.u32.totalorder %s722_s11, %s973_s2 }
  0x39   :  { %p728_p12 = pnand %p726_p11, %p723_p10 }
  0x3b   :  { %731 = shalt.err (!%p728_p12)
}
  0x3c   :  { %s732_s0 = scalar_lea.vmem %s44_s26, 384  ;;  %p737_p0 = scmp.lt.s32.totalorder %s44_s26, %s44_s26 }
  0x3d   :  { %p733_p13 = scmp.ne.s32.totalorder %s44_s26, %s732_s0  ;;  %p738_p1 = scmp.lt.s32.totalorder %s732_s0, %s732_s0 }
  0x3f   :  { %p739_p2 = por %p738_p1, %p737_p0 }
  0x41   :  { %p740_p3 = pnand %p739_p2, %p733_p13 }
  0x43   :  { %743 = shalt.err (!%p740_p3)
}
  0x44   :  { %49 = dma.hbm_to_vmem [thread:$0]  %s973_s2, 384, %s44_s26, [#allocation6], %s799_s10, %s799_s10, %s800_s12  }
  0x45   :  { %s744_s19 = scalar_lea.hbm %s978_s7, 2048 }
  0x46   :  { %p745_p4 = scmp.ne.s32.totalorder %s978_s7, %s744_s19  ;;  %p748_p5 = scmp.lt.u32.totalorder %s744_s19, %s978_s7 }
  0x48   :  { %p750_p6 = pnand %p748_p5, %p745_p4 }
  0x4a   :  { %753 = shalt.err (!%p750_p6)
}
  0x4b   :  { %s754_s22 = scalar_lea.vmem %s74_s28, 2048  ;;  %p759_p8 = scmp.lt.s32.totalorder %s74_s28, %s74_s28 }
  0x4c   :  { %p755_p7 = scmp.ne.s32.totalorder %s74_s28, %s754_s22  ;;  %p760_p9 = scmp.lt.s32.totalorder %s754_s22, %s754_s22 }
  0x4e   :  { %p761_p10 = por %p760_p9, %p759_p8 }
  0x50   :  { %p762_p11 = pnand %p761_p10, %p755_p7 }
  0x52   :  { %765 = shalt.err (!%p762_p11)
}
  0x53   :  { %79 = dma.hbm_to_vmem [thread:$0]  %s978_s7, 2048, %s74_s28, [#allocation9], %s799_s10, %s799_s10, %s800_s12  }
  0x54   :  { %788 = dma.done.wait [#allocation3], 128  }
  0x55   :  { %789 = vsyncadd [#allocation3], 4294967168 }
  0x56   :  { %790 = dma.done.wait [#allocation6], 512  }
  0x57   :  { %791 = vsyncadd [#allocation6], 4294966784 }
  0x58   :  { %792 = dma.done.wait [#allocation9], 4096  }
  0x59   :  { %793 = vsyncadd [#allocation9], 4294963200  ;;  %v803_v0 = vmov 0.0|0.0   ;;  %v804_v1 = vmov 0.0   ;;  %vm805_vm0 = vmmov 0   ;;  %vm103_vm1 = vcmask 64512  }
  0x5a   :  { %594 = vmatprep.subr.bf16.mxu1 %v803_v0  ;;  %510 = vmatprep.subr.mxu0 %v804_v1  ;;  %v98_v2 = vld [vmem:[#allocation7] sm:$0xff]  ;;  %v99_v3 = vld [vmem:[#allocation7 + $0x8] sm:$0xff]  ;;  %v102_v4 = vld [vmem:[%s974_s3] sm:$0xff]  ;;  %vm177_vm2 = vcmask 195584   ;;  %s806_s29 = smov [#allocation11]  }
  0x5b   :  { %512 = vmatprep.mubr.msk.f32.mxu0 %vm805_vm0, %v804_v1  ;;  %521 = vmatprep.mubr.msk.f32.mxu1 %vm805_vm0, %v804_v1  ;;  %v595_v5 = vpack.c.bf16 %v99_v3, %v98_v2  ;;  %v101_v6 = vld [vmem:[#allocation5] sm:$0xff]  ;;  %v261_v8 = vld [vmem:[#allocation8 + $0x8] sm:$0xff]  ;;  %v262_v9 = vld [vmem:[#allocation8 + $0x10] sm:$0xff]  ;;  %s454_s30 = sshll.u32 %s806_s29, 4  ;;  %s455_s30 = int_to_ptr.vmem [resolvable:$true] %s454_s30 }
  0x5c   :  { %511 = vmatpush3.msra.mxu0 %v102_v4  ;;  %v260_v7 = vld [vmem:[#allocation8] sm:$0xff]  ;;  %v263_v11 = vld [vmem:[#allocation8 + $0x18] sm:$0xff]  ;;  %v265_v16 = vld [vmem:[#allocation8 + $0x28] sm:$0xff]  ;;  %s766_s11 = scalar_lea.vmem %s455_s30, 128  ;;  %p771_p13 = scmp.lt.s32.totalorder %s455_s30, %s455_s30 }
  0x5d   :  { %513 = vmatmul.mubr.msk.f32.vlgmr.msra.gmra.mrb[0].mxu0 %vm103_vm1, %v101_v6  ;;  %597 = vmatprep.subr.bf16.mxu0 %v803_v0  ;;  %v598_v10 = vpack.c.bf16 %v261_v8, %v260_v7  ;;  %v100_v12 = vld [vmem:[#allocation7 + $0x10] sm:$0xff]  ;;  %v601_v14 = vpack.c.bf16 %v263_v11, %v262_v9  ;;  %v264_v15 = vld [vmem:[#allocation8 + $0x20] sm:$0xff]  ;;  %v266_v18 = vld [vmem:[#allocation8 + $0x30] sm:$0xff]  ;;  %p767_p12 = scmp.ne.s32.totalorder %s455_s30, %s766_s11  ;;  %p772_p0 = scmp.lt.s32.totalorder %s766_s11, %s766_s11 }
  0x5e   :  { %596 = vmatpush3.bf16.msra.mxu1 %v595_v5  ;;  %556 = vmatprep.mubr.msk.f32.mxu0 %vm805_vm0, %v804_v1  ;;  %v97_v13 = vld [vmem:[#allocation2] sm:$0xff]  ;;  %v604_v17 = vpack.c.bf16 %v265_v16, %v264_v15  ;;  %v268_v21 = vld [vmem:[#allocation8 + $0x40] sm:$0xff]  ;;  %v269_v22 = vld [vmem:[#allocation8 + $0x48] sm:$0xff] }
  0x5f   :  { %519 = vmatprep.subr.mxu1 %v804_v1  ;;  %599 = vmatpush3.bf16.msra.mxu0 %v598_v10  ;;  %v267_v19 = vld [vmem:[#allocation8 + $0x38] sm:$0xff]  ;;  %v610_v23 = vpack.c.bf16 %v269_v22, %v268_v21  ;;  %v270_v24 = vld [vmem:[#allocation8 + $0x50] sm:$0xff]  ;;  %v272_v27 = vld [vmem:[#allocation8 + $0x60] sm:$0xff]  ;;  %p773_p1 = por %p772_p0, %p771_p13 }
  0x60   :  { %600 = vmatprep.subr.bf16.mxu0 %v803_v0  ;;  %v607_v20 = vpack.c.bf16 %v267_v19, %v266_v18  ;;  %v271_v25 = vld [vmem:[#allocation8 + $0x58] sm:$0xff]  ;;  %v273_v28 = vld [vmem:[#allocation8 + $0x68] sm:$0xff]  ;;  %v274_v30 = vld [vmem:[#allocation8 + $0x70] sm:$0xff] }
  0x61   :  { %v613_v26 = vpack.c.bf16 %v271_v25, %v270_v24  ;;  %v616_v29 = vpack.c.bf16 %v273_v28, %v272_v27  ;;  %v275_v31 = vld [vmem:[#allocation8 + $0x78] sm:$0xff]  ;;  %v354_v33 = vld [vmem:[#allocation10] sm:$0xff]  ;;  %v355_v34 = vld [vmem:[#allocation10 + $0x8] sm:$0xff]  ;;  %p774_p2 = pnand %p773_p1, %p767_p12 }
  0x62   :  { %520 = vmatpush3.msra.mxu1 %v100_v12  ;;  %v619_v32 = vpack.c.bf16 %v275_v31, %v274_v30  ;;  %v356_v35 = vld [vmem:[#allocation10 + $0x10] sm:$0xff]  ;;  %v622_v36 = vpack.c.bf16 %v355_v34, %v354_v33  ;;  %v357_v37 = vld [vmem:[#allocation10 + $0x18] sm:$0xff]  ;;  %v358_v39 = vld [vmem:[#allocation10 + $0x20] sm:$0xff] }
  0x63   :  { %522 = vmatmul.mubr.msk.f32.vlgmr.msra.gmra.mrb[0].mxu1 %vm177_vm2, %v97_v13  ;;  %621 = vmatprep.subr.bf16.mxu1 %v803_v0  ;;  %v625_v38 = vpack.c.bf16 %v357_v37, %v356_v35  ;;  %v359_v40 = vld [vmem:[#allocation10 + $0x28] sm:$0xff]  ;;  %v360_v42 = vld [vmem:[#allocation10 + $0x30] sm:$0xff]  ;;  %v361_v43 = vld [vmem:[#allocation10 + $0x38] sm:$0xff] }
  0x64   :  { %602 = vmatpush3.bf16.msra.mxu0 %v601_v14  ;;  %591 = vmatprep.mubr.msk.f32.mxu1 %vm805_vm0, %v804_v1  ;;  %v628_v41 = vpack.c.bf16 %v359_v40, %v358_v39  ;;  %v631_v44 = vpack.c.bf16 %v361_v43, %v360_v42  ;;  %v362_v45 = vld [vmem:[#allocation10 + $0x40] sm:$0xff]  ;;  %v363_v46 = vld [vmem:[#allocation10 + $0x48] sm:$0xff]  ;;  %v364_v48 = vld [vmem:[#allocation10 + $0x50] sm:$0xff] }
  0x65   :  { %603 = vmatprep.subr.bf16.mxu0 %v803_v0  ;;  %623 = vmatpush3.bf16.msra.mxu1 %v622_v36  ;;  %v634_v47 = vpack.c.bf16 %v363_v46, %v362_v45  ;;  %v365_v49 = vld [vmem:[#allocation10 + $0x58] sm:$0xff]  ;;  %v366_v51 = vld [vmem:[#allocation10 + $0x60] sm:$0xff]  ;;  %v367_v52 = vld [vmem:[#allocation10 + $0x68] sm:$0xff] }
  0x66   :  { %624 = vmatprep.subr.bf16.mxu1 %v803_v0  ;;  %v637_v50 = vpack.c.bf16 %v365_v49, %v364_v48  ;;  %v640_v53 = vpack.c.bf16 %v367_v52, %v366_v51  ;;  %v467_v57 = vld [vmem:[%s975_s4] ss:$0 sm:$0xff]  ;;  %v368_v62 = vld [vmem:[#allocation10 + $0x70] sm:$0xff] }
  0x67   :  { %v369_v63 = vld [vmem:[#allocation10 + $0x78] sm:$0xff] }
  0x68   :  { %605 = vmatpush3.bf16.msra.mxu0 %v604_v17  ;;  %v643_v1 = vpack.c.bf16 %v369_v63, %v368_v62  ;;  %v469_v6 = vld [vmem:[%s979_s8] ss:$0 sm:$0xff] }
  0x69   :  { %606 = vmatprep.subr.bf16.mxu0 %v803_v0  ;;  %626 = vmatpush3.bf16.msra.mxu1 %v625_v38 }
  0x6a   :  { %627 = vmatprep.subr.bf16.mxu1 %v803_v0 }
  0x6c   :  { %608 = vmatpush3.bf16.msra.mxu0 %v607_v20 }
  0x6d   :  { %609 = vmatprep.subr.bf16.mxu0 %v803_v0  ;;  %629 = vmatpush3.bf16.msra.mxu1 %v628_v41 }
  0x6e   :  { %630 = vmatprep.subr.bf16.mxu1 %v803_v0 }
  0x70   :  { %611 = vmatpush3.bf16.msra.mxu0 %v610_v23 }
  0x71   :  { %612 = vmatprep.subr.bf16.mxu0 %v803_v0  ;;  %632 = vmatpush3.bf16.msra.mxu1 %v631_v44 }
  0x72   :  { %633 = vmatprep.subr.bf16.mxu1 %v803_v0 }
  0x74   :  { %614 = vmatpush3.bf16.msra.mxu0 %v613_v26 }
  0x75   :  { %615 = vmatprep.subr.bf16.mxu0 %v803_v0  ;;  %635 = vmatpush3.bf16.msra.mxu1 %v634_v47 }
  0x76   :  { %636 = vmatprep.subr.bf16.mxu1 %v803_v0 }
  0x78   :  { %617 = vmatpush3.bf16.msra.mxu0 %v616_v29 }
  0x79   :  { %618 = vmatprep.subr.bf16.mxu0 %v803_v0  ;;  %638 = vmatpush3.bf16.msra.mxu1 %v637_v50 }
  0x7a   :  { %639 = vmatprep.subr.bf16.mxu1 %v803_v0 }
  0x7c   :  { %620 = vmatpush3.bf16.msra.mxu0 %v619_v32 }
  0x7d   :  { %641 = vmatpush3.bf16.msra.mxu1 %v640_v53 }
  0x7e   :  { %642 = vmatprep.subr.bf16.mxu1 %v803_v0  ;;  %v468_v0 = vld [vmem:[%s977_s6] ss:$0 sm:$0xff] }
  0x81   :  { %644 = vmatpush3.bf16.msra.mxu1 %v643_v1 }
 0x130   :  { %v173_v54 = vpop.f32.mrb[0].mxu0 }
 0x131   :  { %v514_v55 = vpop.f32.mrb[1].mxu0 }
 0x136   :  { %v247_v56 = vpop.f32.mrb[0].mxu1 }
 0x137   :  { %v248_v58 = vadd.f32 %v247_v56, %v173_v54  ;;  %v523_v59 = vpop.f32.mrb[1].mxu1 }
 0x139   :  { %v258_v60 = vadd.f32 %v467_v57, %v248_v58 }
 0x13b   :  { %v259_v61 = vmax.f32 %v258_v60, 0.0 }
 0x13d   :  { %557 = vmatmul.mubr.f32.vlgmr.msra.gmra.mrb[2].mxu0 %v259_v61 }
 0x210   :  { %v349_v2 = vpop.f32.mrb[2].mxu0 }
 0x211   :  { %v350_v3 = vadd.f32 %v468_v0, %v349_v2  ;;  %v558_v4 = vpop.f32.mrb[3].mxu0 }
 0x213   :  { %v353_v5 = vmax.f32 %v350_v3, 0.0 }
 0x215   :  { %592 = vmatmul.mubr.f32.vlgmr.msra.gmra.mrb[2].mxu1 %v353_v5 }
 0x2e8   :  { %v443_v7 = vpop.f32.mrb[2].mxu1 }
 0x2e9   :  { %v444_v8 = vadd.f32 %v469_v6, %v443_v7  ;;  %v593_v9 = vpop.f32.mrb[3].mxu1 }
 0x2eb   :  { %447 = vst [vmem:[#allocation11] sm:$0xff] %v444_v8 }
 0x2ec   :  { %777 = shalt.err (!%p774_p2)
}
 0x2ed   :  { %s778_s13 = scalar_lea.hbm %s980_s9, 128 }
 0x2ee   :  { %p779_p3 = scmp.ne.s32.totalorder %s980_s9, %s778_s13  ;;  %p782_p4 = scmp.lt.u32.totalorder %s778_s13, %s980_s9 }
 0x2f0   :  { %p784_p5 = pnand %p782_p4, %p779_p3 }
 0x2f2   :  { %787 = shalt.err (!%p784_p5)
}
 0x2f3   :  { %457 = dma.vmem_to_hbm [thread:$0]  %s455_s30, 128, %s980_s9, [#allocation4]  }
 0x2f4   :  { %794 = dma.done.wait [#allocation4], 128  }
 0x2f5   :  { %795 = vsyncadd [#allocation4], 4294967168 }
 0x2f6   :  { %461 = vsyncpa [#allocation3], 1 }
 0x2f7   :  { %462 = vsyncpa [#allocation6], 1 }
 0x2f8   :  { %463 = vsyncpa [#allocation9], 1 }
 0x2f9   :  { %464 = vsyncpa [#allocation4], 1 }

</bundles_post_ra>
